<compile_context>
chip_gen: v5e
topology: v5e:2x2
jax: 0.10.0
libtpu: 0.0.40
codegen_flags: <defaults>
</compile_context>

<pallas_src>
import jax
import jax.numpy as jnp
from jax.experimental import pallas as pl
from jax.experimental.pallas import tpu as pltpu


# --------------------------------------------------------------------------- kernels
def _linear_kernel(x_ref, w_ref, b_ref, o_ref):
    # x_ref: (TM, D), w_ref: (D, C_pad), b_ref: (1, C_pad) -> o_ref: (TM, C_pad)
    acc = jnp.dot(x_ref[...], w_ref[...], preferred_element_type=jnp.float32)
    o_ref[...] = (acc + b_ref[...]).astype(o_ref.dtype)


def _linear_kernel_ksplit(x_ref, w_ref, b_ref, o_ref, acc_ref):
    # x_ref: (TM, TK), w_ref: (TK, C_pad), acc_ref: (TM, C_pad) f32 accumulator.
    @pl.when(pl.program_id(1) == 0)
    def _():
        acc_ref[...] = jnp.zeros_like(acc_ref)

    acc_ref[...] += jnp.dot(x_ref[...], w_ref[...], preferred_element_type=jnp.float32)

    @pl.when(pl.program_id(1) == pl.num_programs(1) - 1)
    def _():
        o_ref[...] = (acc_ref[...] + b_ref[...]).astype(o_ref.dtype)


# --------------------------------------------------------------------------- helpers
def _round_up(a, m):
    return ((a + m - 1) // m) * m


def _vmem_capacity_bytes():
    try:
        return int(pltpu.get_tpu_info().vmem_capacity_bytes)
    except Exception:
        return 64 << 20  # conservative fallback (v7x per-core VMEM)


# --------------------------------------------------------------------------- wrapper
def logistic_regression_forward(x, weight, bias, *, block_m=1024, block_k=512,
                                use_bf16=False, out_dtype=jnp.float32):
    """
    x:      (batch, input_dim)      float32
    weight: (n_classes, input_dim)  float32   (native PyTorch nn.Linear layout)
    bias:   (n_classes,)            float32
    returns (batch, n_classes)      out_dtype (default float32)
    """
    B, D = x.shape
    C, D2 = weight.shape
    assert D == D2, "weight/input dim mismatch"

    # ---- Lane-dense output: pad class dim up to a multiple of 128 ----------------
    C_pad = max(128, _round_up(C, 128))
    if C_pad != C:
        weight = jnp.pad(weight, ((0, C_pad - C), (0, 0)))
        bias = jnp.pad(bias, (0, C_pad - C))

    # One-time wrapper-side transpose to (D, C_pad): plain (M,K)@(K,N) in-kernel.
    w_t = weight.T
    b2 = bias.reshape(1, C_pad).astype(jnp.float32)

    if use_bf16:
        # NOTE: only a net win when the cast fuses into the pallas_call inputs or
        # the activations arrive bf16 upstream; a standalone cast adds an HBM pass.
        x_in = x.astype(jnp.bfloat16)
        w_t = w_t.astype(jnp.bfloat16)
        esize, row_align = 2, 16      # bf16 sublane packing is (16, 128)
    else:
        x_in = x
        esize, row_align = 4, 8

    out_esize = jnp.dtype(out_dtype).itemsize

    # ---- VMEM budget from the actual chip generation ------------------------------
    vmem_cap = _vmem_capacity_bytes()
    usable = vmem_cap - (8 << 20)          # compiler / internal-scratch headroom
    budget = min(usable, 96 << 20)         # v7x -> ~56 MiB, v5e/v6e -> 96 MiB

    # ---- Batch tile: big, but >= 2 grid steps when B allows (keeps v7x's 2 TCs busy)
    tm_max = _round_up(B, row_align)
    if B >= 2 * row_align:
        tm_max = _round_up(-(-B // 2), row_align)
    tm = max(row_align, min(_round_up(block_m, row_align), tm_max))

    # Footprints count BOTH pipeline buffers for every input (default Buffered(2)).
    def simple_footprint(tm_):
        return (2 * tm_ * D * esize          # x tiles (double-buffered)
                + 2 * D * C_pad * esize      # resident weight (2 pipeline buffers)
                + 2 * C_pad * 4              # bias
                + 2 * tm_ * C_pad * out_esize)

    def ksplit_footprint(tm_, tk_):
        return (2 * tm_ * tk_ * esize
                + 2 * tk_ * C_pad * esize
                + 2 * C_pad * 4
                + 2 * tm_ * C_pad * out_esize
                + tm_ * C_pad * 4)           # f32 accumulator scratch

    use_ksplit = simple_footprint(row_align) > budget

    if not use_ksplit:
        # -------- Resident-weight path: grid over batch only --------------------
        while tm > row_align and simple_footprint(tm) > budget:
            tm = max(row_align, ((tm // 2) // row_align) * row_align)
        footprint = simple_footprint(tm)

        grid_spec = pltpu.PrefetchScalarGridSpec(
            num_scalar_prefetch=0,
            grid=(pl.cdiv(B, tm),),
            in_specs=[
                pl.BlockSpec((tm, D), lambda i: (i, 0)),       # x: tiled over batch
                pl.BlockSpec((D, C_pad), lambda i: (0, 0)),    # W: VMEM-resident
                pl.BlockSpec((1, C_pad), lambda i: (0, 0)),    # bias: VMEM-resident
            ],
            out_specs=pl.BlockSpec((tm, C_pad), lambda i: (i, 0)),
        )
        kernel = _linear_kernel
        dim_sem = ("parallel",)
        x_call, w_call = x_in, w_t
    else:
        # -------- K-split path: weight streamed over an "arbitrary" D axis -------
        tk = min(_round_up(block_k, 128), _round_up(D, 128))
        while tk > 128 and ksplit_footprint(row_align, tk) > budget:
            tk = max(128, ((tk // 2) // 128) * 128)
        while tm > row_align and ksplit_footprint(tm, tk) > budget:
            tm = max(row_align, ((tm // 2) // row_align) * row_align)
        footprint = ksplit_footprint(tm, tk)

        D_pad = _round_up(D, tk)
        x_call = jnp.pad(x_in, ((0, 0), (0, D_pad - D))) if D_pad != D else x_in
        w_call = jnp.pad(w_t, ((0, D_pad - D), (0, 0))) if D_pad != D else w_t

        grid_spec = pltpu.PrefetchScalarGridSpec(
            num_scalar_prefetch=0,
            grid=(pl.cdiv(B, tm), D_pad // tk),
            in_specs=[
                pl.BlockSpec((tm, tk), lambda i, k: (i, k)),
                pl.BlockSpec((tk, C_pad), lambda i, k: (k, 0)),
                pl.BlockSpec((1, C_pad), lambda i, k: (0, 0)),
            ],
            out_specs=pl.BlockSpec((tm, C_pad), lambda i, k: (i, 0)),
            scratch_shapes=[pltpu.VMEM((tm, C_pad), jnp.float32)],
        )
        kernel = _linear_kernel_ksplit
        dim_sem = ("parallel", "arbitrary")

    vmem_limit = int(min(usable, max(32 << 20, footprint + footprint // 4)))

    cost = pl.CostEstimate(
        flops=2 * B * D * C_pad,
        bytes_accessed=esize * (B * D + D * C_pad) + 4 * C_pad + out_esize * B * C_pad,
        transcendentals=0,
    )

    out = pl.pallas_call(
        kernel,
        out_shape=jax.ShapeDtypeStruct((B, C_pad), out_dtype),
        grid_spec=grid_spec,
        compiler_params=pltpu.CompilerParams(
            dimension_semantics=dim_sem,
            vmem_limit_bytes=vmem_limit,
        ),
        cost_estimate=cost,
    )(x_call, w_call, b2)

    # TODO(synk): fuse the real consumer into the epilogue / keep padded layout to
    # avoid this extra XLA slice pass when n_classes is not a multiple of 128.
    return out[:, :C] if C_pad != C else out


if __name__ == "__main__":
    # Small shapes consistent with the module: batch=8, input_dim=32, n_classes=16.
    key = jax.random.PRNGKey(0)
    k_x, k_w, k_b = jax.random.split(key, 3)

    batch, input_dim, n_classes = 8, 32, 16

    x = jax.random.normal(k_x, (batch, input_dim), dtype=jnp.float32)
    # Deterministic "nn.Linear"-style parameters (uniform in +-1/sqrt(input_dim)).
    bound = 1.0 / jnp.sqrt(jnp.float32(input_dim))
    weight = jax.random.uniform(k_w, (n_classes, input_dim), jnp.float32, -bound, bound)
    bias = jax.random.uniform(k_b, (n_classes,), jnp.float32, -bound, bound)

    out = logistic_regression_forward(x, weight, bias)
    out = jax.block_until_ready(out)

    # Correctness check against plain-JAX reference (forward is a plain linear layer;
    # the PyTorch module applies no sigmoid/softmax in forward).
    ref = x @ weight.T + bias
    assert out.shape == (batch, n_classes)
    assert jnp.allclose(out, ref, atol=1e-5, rtol=1e-5)

    print("KERNEL_OK")
</pallas_src>

<mosaic_0001>
module attributes {stable_mosaic.version = 11 : i64} {
  func.func @_linear_kernel(%arg0: i32, %arg1: memref<8x32xf32, #tpu.memory_space<vmem>>, %arg2: memref<32x128xf32, #tpu.memory_space<vmem>>, %arg3: memref<1x128xf32, #tpu.memory_space<vmem>>, %arg4: memref<8x128xf32, #tpu.memory_space<vmem>>) attributes {dimension_semantics = [#tpu.dimension_semantics<parallel>], iteration_bounds = array<i64: 1>, scalar_prefetch = 0 : i64, scratch_operands = 0 : i64, tpu.core_type = #tpu.core_type<tc>, window_params = [{transform_indices = @transform_0, window_bounds = array<i64: 8, 32>}, {pipeline_mode = #tpu.pipeline_mode<synchronous>, transform_indices = @transform_1, window_bounds = array<i64: 32, 128>}, {pipeline_mode = #tpu.pipeline_mode<synchronous>, transform_indices = @transform_2, window_bounds = array<i64: 1, 128>}, {transform_indices = @transform_3, window_bounds = array<i64: 8, 128>}]} {
    %c0 = arith.constant 0 : index
    %c0_0 = arith.constant 0 : index
    %0 = vector.load %arg1[%c0, %c0_0] : memref<8x32xf32, #tpu.memory_space<vmem>>, vector<8x32xf32>
    %c0_1 = arith.constant 0 : index
    %c0_2 = arith.constant 0 : index
    %1 = vector.load %arg2[%c0_1, %c0_2] : memref<32x128xf32, #tpu.memory_space<vmem>>, vector<32x128xf32>
    %cst = arith.constant dense<0.000000e+00> : vector<8x128xf32>
    %2 = tpu.matmul %0, %1, %cst {dimension_numbers = #tpu.dot_dimension_numbers<[1], [0], [0], [1], [0, 0, 1, 1], [], []>} : vector<8x32xf32>, vector<32x128xf32>, vector<8x128xf32> -> vector<8x128xf32>
    %c0_3 = arith.constant 0 : index
    %c0_4 = arith.constant 0 : index
    %3 = vector.load %arg3[%c0_3, %c0_4] : memref<1x128xf32, #tpu.memory_space<vmem>>, vector<1x128xf32>
    %4 = vector.broadcast %3 : vector<1x128xf32> to vector<8x128xf32>
    %5 = arith.addf %2, %4 : vector<8x128xf32>
    %c0_5 = arith.constant 0 : index
    %c0_6 = arith.constant 0 : index
    %6 = vector.load %arg4[%c0_5, %c0_6] : memref<8x128xf32, #tpu.memory_space<vmem>>, vector<8x128xf32>
    tpu.vector_store %arg4[%c0_5, %c0_6], %5 {strides = array<i32>} : memref<8x128xf32, #tpu.memory_space<vmem>>, vector<8x128xf32>,
    return
  }
  func.func @transform_0(%arg0: i32) -> (i32, i32) {
    %c0_i32 = arith.constant 0 : i32
    %c0_i32_0 = arith.constant 0 : i32
    return %arg0, %c0_i32 : i32, i32
  }
  func.func @transform_1(%arg0: i32) -> (i32, i32) {
    %c0_i32 = arith.constant 0 : i32
    %c0_i32_0 = arith.constant 0 : i32
    %c0_i32_1 = arith.constant 0 : i32
    return %c0_i32, %c0_i32_0 : i32, i32
  }
  func.func @transform_2(%arg0: i32) -> (i32, i32) {
    %c0_i32 = arith.constant 0 : i32
    %c0_i32_0 = arith.constant 0 : i32
    %c0_i32_1 = arith.constant 0 : i32
    return %c0_i32, %c0_i32_0 : i32, i32
  }
  func.func @transform_3(%arg0: i32) -> (i32, i32) {
    %c0_i32 = arith.constant 0 : i32
    %c0_i32_0 = arith.constant 0 : i32
    return %arg0, %c0_i32 : i32, i32
  }
}

</mosaic_0001>

<bundles_post_ra>
// kernel: tpu_custom_call.1
= control target key start
LH: loop header
LB: loop body
LE: loop exit
PB: predicated region body
PF: predicated region fallthrough
CT: control target
= control target key end

     0   :  { %8 = vsyncpa [#allocation3], 0  ;;  %s219_s0 = inlined_call_operand.hbm [shape: f32[8,32], index: 0, kind: input, shape index: {}]   ;;  %s220_s1 = inlined_call_operand.hbm [shape: f32[32,128], index: 1, kind: input, shape index: {}]   ;;  %s221_s2 = inlined_call_operand.vmem [shape: f32[1,128], index: 2, kind: input, shape index: {}]   ;;  %s222_s3 = inlined_call_operand.hbm [shape: f32[8,128], index: 3, kind: output, shape index: {}]  }
   0x1   :  { %9 = vsyncpa [#allocation6], 0 }
   0x2   :  { %10 = vsyncpa [#allocation4], 0  ;;  %s16_s14 = sshll.u32 %s219_s0, 4  ;;  %s182_s15 = smov [#allocation2]   ;;  %s17_s14 = int_to_ptr.hbm [resolvable:$true] %s16_s14 }
   0x3   :  { %s18_s16 = sshll.u32 %s182_s15, 4  ;;  %s26_s19 = sshll.u32 %s220_s1, 4  ;;  %s19_s16 = int_to_ptr.vmem [resolvable:$true] %s18_s16  ;;  %s27_s19 = int_to_ptr.hbm [resolvable:$true] %s26_s19 }
   0x4   :  { %21 = dma.hbm_to_vmem [thread:$0]  %s17_s14, 128, %s19_s16, [#allocation3]  }
   0x5   :  { %s183_s20 = smov [#allocation5]   ;;  %s184_s22 = smov 128  }
   0x6   :  { %s28_s21 = sshll.u32 %s183_s20, 4  ;;  %s185_s23 = smov 8   ;;  %s29_s21 = int_to_ptr.vmem [resolvable:$true] %s28_s21 }
   0x7   :  { %34 = dma.hbm_to_vmem [thread:$0]  %s27_s19, 512, %s29_s21, [#allocation6], %s184_s22, %s184_s22, %s185_s23  }
   0x8   :  { %176 = dma.done.wait [#allocation3], 128  }
   0x9   :  { %177 = vsyncadd [#allocation3], 4294967168 }
   0xa   :  { %178 = dma.done.wait [#allocation6], 512  }
   0xb   :  { %179 = vsyncadd [#allocation6], 4294966784  ;;  %v49_v0 = vld [vmem:[#allocation5 + $0x18] sm:$0xff]  ;;  %v48_v1 = vld [vmem:[#allocation5 + $0x10] sm:$0xff]  ;;  %vm54_vm0 = vcmask 261120   ;;  %s186_s24 = smov [#allocation7]  }
   0xc   :  { %70 = vmatpush.msra.mxu0 %v49_v0  ;;  %v47_v2 = vld [vmem:[#allocation5 + $0x8] sm:$0xff]  ;;  %v46_v3 = vld [vmem:[#allocation5] sm:$0xff]  ;;  %v45_v4 = vld [vmem:[#allocation2] sm:$0xff]  ;;  %s84_s25 = sshll.u32 %s186_s24, 4  ;;  %s86_s28 = sshll.u32 %s222_s3, 4  ;;  %s85_s25 = int_to_ptr.vmem [resolvable:$true] %s84_s25  ;;  %s87_s28 = int_to_ptr.hbm [resolvable:$true] %s86_s28 }
   0xd   :  { %v103_v5 = vld [vmem:[%s221_s2] ss:$0 sm:$0xff] }
   0xe   :  { %71 = vmatpush.msra.mxu0 %v48_v1 }
  0x10   :  { %72 = vmatpush.msra.mxu0 %v47_v2 }
  0x12   :  { %73 = vmatpush.msra.mxu0 %v46_v3 }
  0x13   :  { %97 = vmatmul.msk.f32.vlgmr.msra.gmra.mxu0 %vm54_vm0, %v45_v4 }
  0x90   :  { %v75_v6 = vpop.f32.mrf.mxu0 }
  0x91   :  { %v76_v7 = vadd.f32 %v103_v5, %v75_v6 }
  0x93   :  { %78 = vst [vmem:[#allocation7] sm:$0xff] %v76_v7 }
  0x94   :  { %89 = dma.vmem_to_hbm [thread:$0]  %s85_s25, 128, %s87_s28, [#allocation4]  }
  0x95   :  { %180 = dma.done.wait [#allocation4], 128  }
  0x96   :  { %181 = vsyncadd [#allocation4], 4294967168 }
  0x97   :  { %94 = vsyncpa [#allocation3], 1 }
  0x98   :  { %95 = vsyncpa [#allocation6], 1 }
  0x99   :  { %96 = vsyncpa [#allocation4], 1 }

</bundles_post_ra>
